<compile_context>
chip_gen: v7x
topology: tpu7x:2x2x1
jax: 0.10.0
libtpu: 0.0.40
codegen_flags: <defaults>
</compile_context>

<pallas_src>
import jax
import jax.numpy as jnp
from jax.experimental import pallas as pl
from jax.experimental.pallas import tpu as pltpu

_LANE = 128       # vreg lane width (last dim)
_MIN_TILE_B = 16  # bf16 min sublane tile; also a legal (multiple-of-8) f32 tile


def _round_up(n, m):
    return ((n + m - 1) // m) * m


def _cdiv(a, b):
    return -(-a // b)


def _a2c_forward_kernel(x_ref, w1_ref, b1_ref, w2_ref, b2_ref, o_ref, xpad_ref):
    """One batch tile of  relu(relu(x @ w1 + b1) @ w2 + b2).

    x_ref   : (TB, S)      f32  -- streamed, feature dim unpadded (S may be <128)
    w1_ref  : (S_p, F1_p)  cdt  -- VMEM-resident, zero-padded to 128 multiples
    b1_ref  : (1, F1_p)    f32
    w2_ref  : (F1_p, F2_p) cdt
    b2_ref  : (1, F2_p)    f32
    o_ref   : (TB, F2)     f32  -- true (unpadded) output width
    xpad_ref: (TB, S_p)    f32  -- scratch: lane-padded copy of the x tile
    """
    s = x_ref.shape[1]
    f2 = o_ref.shape[1]
    cdt = w1_ref.dtype  # compute dtype for the MXU (bf16 or f32)

    # Zero-pad the streamed activation tile to a 128-lane slab in VMEM so both
    # matmuls run with MXU-native 128-aligned shapes.  Re-zero every grid step
    # so correctness does not depend on how the grid is split across cores.
    xpad_ref[...] = jnp.zeros_like(xpad_ref)
    xpad_ref[:, :s] = x_ref[...]

    # fc1 + ReLU (f32 accumulation on the MXU).
    h1 = jnp.dot(xpad_ref[...].astype(cdt), w1_ref[...],
                 preferred_element_type=jnp.float32)
    h1 = jnp.maximum(h1 + b1_ref[...], 0.0)

    # fc2 + ReLU.
    h2 = jnp.dot(h1.astype(cdt), w2_ref[...],
                 preferred_element_type=jnp.float32)
    h2 = jnp.maximum(h2 + b2_ref[...], 0.0)

    # Drop the padded output columns in VMEM so only the true F2-wide result is
    # written back to HBM.
    o_ref[...] = h2[:, :f2].astype(o_ref.dtype)


def a2c_forward(x, w1, b1, w2, b2, *, max_tile_b=1024,
                compute_dtype=jnp.bfloat16):
    """Pallas implementation of A2CNet.forward.

    x:  [B, state_size] f32
    w1: [state_size, fc1_size], b1: [1, fc1_size]   (weights stored [in, out])
    w2: [fc1_size, fc2_size],   b2: [1, fc2_size]
    returns: [B, fc2_size] f32
    """
    B, S = x.shape
    S_w, F1 = w1.shape
    F1_w, F2 = w2.shape
    assert S == S_w and F1 == F1_w
    assert b1.shape == (1, F1) and b2.shape == (1, F2)

    S_p = _round_up(S, _LANE)
    F1_p = _round_up(F1, _LANE)
    F2_p = _round_up(F2, _LANE)

    # --- batch tile selection -------------------------------------------------
    # tile_b is a multiple of 16; tiles are balanced over the batch; >= 2 grid
    # steps whenever possible so both v7x TensorCores get work.
    max_tile_b = max(_MIN_TILE_B, (max_tile_b // _MIN_TILE_B) * _MIN_TILE_B)
    n_tiles = _cdiv(B, max_tile_b)
    if B >= 2 * _MIN_TILE_B:
        n_tiles = max(n_tiles, 2)
    tile_b = _round_up(_cdiv(B, n_tiles), _MIN_TILE_B)
    n_tiles = _cdiv(B, tile_b)          # drop tiles made fully empty by rounding
    B_p = tile_b * n_tiles

    # Only the batch dim of x is ever padded (features stream unpadded from
    # HBM).  Padded rows compute relu(relu(b1) @ w2 + b2) != 0 but are sliced
    # away below; any future fusion that reduces over the batch must mask them.
    xp = x if B_p == B else jnp.pad(x, ((0, B_p - B), (0, 0)))

    # Weights/biases are tiny and VMEM-resident: pad once to 128-aligned shapes
    # and cast the weights to the compute dtype (bf16 -> fast MXU path, half
    # the resident footprint; accumulation stays f32).
    w1p = jnp.pad(w1, ((0, S_p - S), (0, F1_p - F1))).astype(compute_dtype)
    b1p = jnp.pad(b1, ((0, 0), (0, F1_p - F1))).astype(jnp.float32)
    w2p = jnp.pad(w2, ((0, F1_p - F1), (0, F2_p - F2))).astype(compute_dtype)
    b2p = jnp.pad(b2, ((0, 0), (0, F2_p - F2))).astype(jnp.float32)

    nbytes = lambda a: a.size * a.dtype.itemsize
    cost = pl.CostEstimate(
        flops=2 * B_p * S_p * F1_p + 2 * B_p * F1_p * F2_p,
        transcendentals=0,
        bytes_accessed=(nbytes(xp) + nbytes(w1p) + nbytes(b1p)
                        + nbytes(w2p) + nbytes(b2p) + 4 * B_p * F2),
    )

    out = pl.pallas_call(
        _a2c_forward_kernel,
        out_shape=jax.ShapeDtypeStruct((B_p, F2), jnp.float32),
        grid=(n_tiles,),
        in_specs=[
            pl.BlockSpec((tile_b, S), lambda i: (i, 0)),    # x streams over batch
            pl.BlockSpec((S_p, F1_p), lambda i: (0, 0)),    # weights stay resident
            pl.BlockSpec((1, F1_p), lambda i: (0, 0)),
            pl.BlockSpec((F1_p, F2_p), lambda i: (0, 0)),
            pl.BlockSpec((1, F2_p), lambda i: (0, 0)),
        ],
        out_specs=pl.BlockSpec((tile_b, F2), lambda i: (i, 0)),
        scratch_shapes=[pltpu.VMEM((tile_b, S_p), jnp.float32)],
        compiler_params=pltpu.CompilerParams(
            dimension_semantics=("parallel",),   # batch-shard across TCs on v7x
            vmem_limit_bytes=32 * 1024 * 1024,
        ),
        cost_estimate=cost,
    )(xp, w1p, b1p, w2p, b2p)

    return out if B_p == B else out[:B]


def init_params(key, state_size, fc1_size, fc2_size):
    """Deterministic synthetic parameters (xavier-normal weights, normal biases)."""
    k1, k2, k3, k4 = jax.random.split(key, 4)

    def xavier(k, fan_in, fan_out):
        std = (2.0 / (fan_in + fan_out)) ** 0.5
        # stored as [in, out] so the kernel does x @ w
        return std * jax.random.normal(k, (fan_in, fan_out), dtype=jnp.float32)

    w1 = xavier(k1, state_size, fc1_size)
    b1 = jax.random.normal(k2, (1, fc1_size), dtype=jnp.float32)
    w2 = xavier(k3, fc1_size, fc2_size)
    b2 = jax.random.normal(k4, (1, fc2_size), dtype=jnp.float32)
    return w1, b1, w2, b2


def _reference(x, w1, b1, w2, b2, *, compute_dtype=jnp.float32):
    """Pure-JAX reference with the same compute-dtype convention as the kernel."""
    cdt = compute_dtype
    h1 = jnp.dot(x.astype(cdt), w1.astype(cdt),
                 preferred_element_type=jnp.float32) + b1
    h1 = jnp.maximum(h1, 0.0)
    h2 = jnp.dot(h1.astype(cdt), w2.astype(cdt),
                 preferred_element_type=jnp.float32) + b2
    return jnp.maximum(h2, 0.0)


if __name__ == "__main__":
    # Small shapes consistent with the module: state_size=16, fc1=32, fc2=32.
    state_size, fc1_size, fc2_size = 16, 32, 32

    key = jax.random.PRNGKey(0)
    kx1, kx2, kx3, kp = jax.random.split(key, 4)
    w1, b1, w2, b2 = init_params(kp, state_size, fc1_size, fc2_size)

    # Case 1: tiny batch, single grid step, default bf16 MXU path.
    x1 = jax.random.normal(kx1, (8, state_size), dtype=jnp.float32)
    out1 = a2c_forward(x1, w1, b1, w2, b2)
    jax.block_until_ready(out1)
    ref1 = _reference(x1, w1, b1, w2, b2, compute_dtype=jnp.bfloat16)
    assert out1.shape == (8, fc2_size)
    assert jnp.allclose(out1, ref1, atol=1e-3, rtol=1e-3)

    # Case 2: batch not a tile multiple, 2-step streamed grid, bf16.
    x2 = jax.random.normal(kx2, (20, state_size), dtype=jnp.float32)
    out2 = a2c_forward(x2, w1, b1, w2, b2, max_tile_b=16)
    jax.block_until_ready(out2)
    ref2 = _reference(x2, w1, b1, w2, b2, compute_dtype=jnp.bfloat16)
    assert out2.shape == (20, fc2_size)
    assert jnp.allclose(out2, ref2, atol=1e-3, rtol=1e-3)

    # Case 3: f32 compute path, balanced 2-tile grid (exercises the v7x
    # >=2-grid-step rule at B=40 -> two tiles of 32).
    x3 = jax.random.normal(kx3, (40, state_size), dtype=jnp.float32)
    out3 = a2c_forward(x3, w1, b1, w2, b2, compute_dtype=jnp.float32)
    jax.block_until_ready(out3)
    ref3 = _reference(x3, w1, b1, w2, b2, compute_dtype=jnp.float32)
    assert out3.shape == (40, fc2_size)
    assert jnp.allclose(out3, ref3, atol=1e-4, rtol=1e-4)

    print("KERNEL_OK")
</pallas_src>

<mosaic_0001>
module attributes {stable_mosaic.version = 11 : i64} {
  func.func @_a2c_forward_kernel(%arg0: i32, %arg1: memref<16x16xf32, #tpu.memory_space<vmem>>, %arg2: memref<128x128xbf16, #tpu.memory_space<vmem>>, %arg3: memref<1x128xf32, #tpu.memory_space<vmem>>, %arg4: memref<128x128xbf16, #tpu.memory_space<vmem>>, %arg5: memref<1x128xf32, #tpu.memory_space<vmem>>, %arg6: memref<16x32xf32, #tpu.memory_space<vmem>>, %arg7: memref<16x128xf32, #tpu.memory_space<vmem>>) attributes {dimension_semantics = [#tpu.dimension_semantics<parallel>], iteration_bounds = array<i64: 1>, scalar_prefetch = 0 : i64, scratch_operands = 1 : i64, tpu.core_type = #tpu.core_type<tc>, window_params = [{transform_indices = @transform_0, window_bounds = array<i64: 16, 16>}, {pipeline_mode = #tpu.pipeline_mode<synchronous>, transform_indices = @transform_1, window_bounds = array<i64: 128, 128>}, {pipeline_mode = #tpu.pipeline_mode<synchronous>, transform_indices = @transform_2, window_bounds = array<i64: 1, 128>}, {pipeline_mode = #tpu.pipeline_mode<synchronous>, transform_indices = @transform_3, window_bounds = array<i64: 128, 128>}, {pipeline_mode = #tpu.pipeline_mode<synchronous>, transform_indices = @transform_4, window_bounds = array<i64: 1, 128>}, {transform_indices = @transform_5, window_bounds = array<i64: 16, 32>}]} {
    %cst = arith.constant 0.000000e+00 : f32
    %0 = vector.broadcast %cst : f32 to vector<16x128xf32>
    %c0 = arith.constant 0 : index
    %c0_0 = arith.constant 0 : index
    %1 = vector.load %arg7[%c0, %c0_0] : memref<16x128xf32, #tpu.memory_space<vmem>>, vector<16x128xf32>
    tpu.vector_store %arg7[%c0, %c0_0], %0 {strides = array<i32>} : memref<16x128xf32, #tpu.memory_space<vmem>>, vector<16x128xf32>,
    %c0_1 = arith.constant 0 : index
    %c0_2 = arith.constant 0 : index
    %2 = vector.load %arg1[%c0_1, %c0_2] : memref<16x16xf32, #tpu.memory_space<vmem>>, vector<16x16xf32>
    %c0_3 = arith.constant 0 : index
    %c0_4 = arith.constant 0 : index
    %3 = vector.load %arg7[%c0_3, %c0_4] : memref<16x128xf32, #tpu.memory_space<vmem>>, vector<16x16xf32>
    tpu.vector_store %arg7[%c0_3, %c0_4], %2 {strides = array<i32>} : memref<16x128xf32, #tpu.memory_space<vmem>>, vector<16x16xf32>,
    %c0_5 = arith.constant 0 : index
    %c0_6 = arith.constant 0 : index
    %4 = vector.load %arg7[%c0_5, %c0_6] : memref<16x128xf32, #tpu.memory_space<vmem>>, vector<16x128xf32>
    %5 = arith.truncf %4 : vector<16x128xf32> to vector<16x128xbf16>
    %c0_7 = arith.constant 0 : index
    %c0_8 = arith.constant 0 : index
    %6 = vector.load %arg2[%c0_7, %c0_8] : memref<128x128xbf16, #tpu.memory_space<vmem>>, vector<128x128xbf16>
    %cst_9 = arith.constant dense<0.000000e+00> : vector<16x128xf32>
    %7 = tpu.matmul %5, %6, %cst_9 {dimension_numbers = #tpu.dot_dimension_numbers<[1], [0], [0], [1], [0, 0, 1, 1], [], []>} : vector<16x128xbf16>, vector<128x128xbf16>, vector<16x128xf32> -> vector<16x128xf32>
    %c0_10 = arith.constant 0 : index
    %c0_11 = arith.constant 0 : index
    %8 = vector.load %arg3[%c0_10, %c0_11] : memref<1x128xf32, #tpu.memory_space<vmem>>, vector<1x128xf32>
    %9 = vector.broadcast %8 : vector<1x128xf32> to vector<16x128xf32>
    %10 = arith.addf %7, %9 : vector<16x128xf32>
    %cst_12 = arith.constant 0.000000e+00 : f32
    %11 = vector.broadcast %cst_12 : f32 to vector<16x128xf32>
    %12 = arith.maximumf %10, %11 : vector<16x128xf32>
    %13 = arith.truncf %12 : vector<16x128xf32> to vector<16x128xbf16>
    %c0_13 = arith.constant 0 : index
    %c0_14 = arith.constant 0 : index
    %14 = vector.load %arg4[%c0_13, %c0_14] : memref<128x128xbf16, #tpu.memory_space<vmem>>, vector<128x128xbf16>
    %cst_15 = arith.constant dense<0.000000e+00> : vector<16x128xf32>
    %15 = tpu.matmul %13, %14, %cst_15 {dimension_numbers = #tpu.dot_dimension_numbers<[1], [0], [0], [1], [0, 0, 1, 1], [], []>} : vector<16x128xbf16>, vector<128x128xbf16>, vector<16x128xf32> -> vector<16x128xf32>
    %c0_16 = arith.constant 0 : index
    %c0_17 = arith.constant 0 : index
    %16 = vector.load %arg5[%c0_16, %c0_17] : memref<1x128xf32, #tpu.memory_space<vmem>>, vector<1x128xf32>
    %17 = vector.broadcast %16 : vector<1x128xf32> to vector<16x128xf32>
    %18 = arith.addf %15, %17 : vector<16x128xf32>
    %cst_18 = arith.constant 0.000000e+00 : f32
    %19 = vector.broadcast %cst_18 : f32 to vector<16x128xf32>
    %20 = arith.maximumf %18, %19 : vector<16x128xf32>
    %21 = vector.extract_strided_slice %20 {offsets = [0, 0], sizes = [16, 32], strides = [1, 1]} : vector<16x128xf32> to vector<16x32xf32>
    %c0_19 = arith.constant 0 : index
    %c0_20 = arith.constant 0 : index
    %22 = vector.load %arg6[%c0_19, %c0_20] : memref<16x32xf32, #tpu.memory_space<vmem>>, vector<16x32xf32>
    tpu.vector_store %arg6[%c0_19, %c0_20], %21 {strides = array<i32>} : memref<16x32xf32, #tpu.memory_space<vmem>>, vector<16x32xf32>,
    return
  }
  func.func @transform_0(%arg0: i32) -> (i32, i32) {
    %c0_i32 = arith.constant 0 : i32
    %c0_i32_0 = arith.constant 0 : i32
    return %arg0, %c0_i32 : i32, i32
  }
  func.func @transform_1(%arg0: i32) -> (i32, i32) {
    %c0_i32 = arith.constant 0 : i32
    %c0_i32_0 = arith.constant 0 : i32
    %c0_i32_1 = arith.constant 0 : i32
    return %c0_i32, %c0_i32_0 : i32, i32
  }
  func.func @transform_2(%arg0: i32) -> (i32, i32) {
    %c0_i32 = arith.constant 0 : i32
    %c0_i32_0 = arith.constant 0 : i32
    %c0_i32_1 = arith.constant 0 : i32
    return %c0_i32, %c0_i32_0 : i32, i32
  }
  func.func @transform_3(%arg0: i32) -> (i32, i32) {
    %c0_i32 = arith.constant 0 : i32
    %c0_i32_0 = arith.constant 0 : i32
    %c0_i32_1 = arith.constant 0 : i32
    return %c0_i32, %c0_i32_0 : i32, i32
  }
  func.func @transform_4(%arg0: i32) -> (i32, i32) {
    %c0_i32 = arith.constant 0 : i32
    %c0_i32_0 = arith.constant 0 : i32
    %c0_i32_1 = arith.constant 0 : i32
    return %c0_i32, %c0_i32_0 : i32, i32
  }
  func.func @transform_5(%arg0: i32) -> (i32, i32) {
    %c0_i32 = arith.constant 0 : i32
    %c0_i32_0 = arith.constant 0 : i32
    return %arg0, %c0_i32 : i32, i32
  }
}

</mosaic_0001>

<bundles_post_ra>
// kernel: tpu_custom_call.1
= control target key start
LH: loop header
LB: loop body
LE: loop exit
PB: predicated region body
PF: predicated region fallthrough
CT: control target
= control target key end

     0   :  { %10 = vsyncpa [#allocation4], 0  ;;  %s625_s0 = inlined_call_operand.hbm [shape: f32[16,16], index: 0, kind: input, shape index: {}]   ;;  %s626_s1 = inlined_call_operand.hbm [shape: bf16[128,128], index: 1, kind: input, shape index: {}]   ;;  %s627_s2 = inlined_call_operand.vmem [shape: f32[1,128], index: 2, kind: input, shape index: {}]   ;;  %s628_s3 = inlined_call_operand.hbm [shape: bf16[128,128], index: 3, kind: input, shape index: {}]   ;;  %s629_s4 = inlined_call_operand.vmem [shape: f32[1,128], index: 4, kind: input, shape index: {}]   ;;  %s630_s5 = inlined_call_operand.hbm [shape: f32[16,32], index: 5, kind: output, shape index: {}]  }
   0x1   :  { %11 = vsyncpa [#allocation7], 0 }
   0x2   :  { %12 = vsyncpa [#allocation5], 0  ;;  %s519_s18 = smov [#allocation6]   ;;  %s425_s22 = scalar_lea.hbm %s626_s1, 1024 }
   0x3   :  { %s30_s19 = sshll.u32 %s519_s18, 4  ;;  %p426_p0 = scmp.ne.s32.totalorder %s626_s1, %s425_s22  ;;  %s31_s19 = int_to_ptr.vmem [resolvable:$true] %s30_s19 }
   0x4   :  { %p429_p1 = scmp.lt.u32.totalorder %s425_s22, %s626_s1 }
   0x6   :  { %p431_p2 = pnand %p429_p1, %p426_p0 }
   0x8   :  { %434 = shalt.err (!%p431_p2)
}
   0x9   :  { %s435_s27 = scalar_lea.vmem %s31_s19, 1024  ;;  %p440_p4 = scmp.lt.s32.totalorder %s31_s19, %s31_s19 }
   0xa   :  { %p436_p3 = scmp.ne.s32.totalorder %s31_s19, %s435_s27  ;;  %p441_p5 = scmp.lt.s32.totalorder %s435_s27, %s435_s27 }
   0xc   :  { %p442_p6 = por %p441_p5, %p440_p4 }
   0xe   :  { %p443_p7 = pnand %p442_p6, %p436_p3 }
  0x10   :  { %446 = shalt.err (!%p443_p7)
}
  0x11   :  { %s520_s28 = smov 64   ;;  %s521_s29 = smov 4  }
  0x12   :  { %36 = dma.hbm_to_vmem [thread:$0]  %s626_s1, 1024, %s31_s19, [#allocation7], %s520_s28, %s520_s28, %s521_s29  }
  0x13   :  { %s522_s7 = smov [#allocation3]   ;;  %s447_s11 = scalar_lea.hbm %s625_s0, 256 }
  0x14   :  { %s18_s8 = sshll.u32 %s522_s7, 4  ;;  %p448_p8 = scmp.ne.s32.totalorder %s625_s0, %s447_s11  ;;  %s19_s8 = int_to_ptr.vmem [resolvable:$true] %s18_s8 }
  0x15   :  { %p451_p9 = scmp.lt.u32.totalorder %s447_s11, %s625_s0 }
  0x17   :  { %p453_p10 = pnand %p451_p9, %p448_p8 }
  0x19   :  { %456 = shalt.err (!%p453_p10)
}
  0x1a   :  { %s457_s16 = scalar_lea.vmem %s19_s8, 256  ;;  %p462_p12 = scmp.lt.s32.totalorder %s19_s8, %s19_s8 }
  0x1b   :  { %p458_p11 = scmp.ne.s32.totalorder %s19_s8, %s457_s16  ;;  %p463_p13 = scmp.lt.s32.totalorder %s457_s16, %s457_s16 }
  0x1d   :  { %p464_p0 = por %p463_p13, %p462_p12 }
  0x1f   :  { %p465_p1 = pnand %p464_p0, %p458_p11 }
  0x21   :  { %468 = shalt.err (!%p465_p1)
}
  0x22   :  { %s523_s1 = smov 128   ;;  %s524_s17 = smov 8  }
  0x23   :  { %24 = dma.hbm_to_vmem [thread:$0]  %s625_s0, 256, %s19_s8, [#allocation4], %s523_s1, %s523_s1, %s524_s17  }
  0x24   :  { %s525_s20 = smov [#allocation8]   ;;  %s469_s24 = scalar_lea.hbm %s628_s3, 1024 }
  0x25   :  { %s44_s21 = sshll.u32 %s525_s20, 4  ;;  %p470_p2 = scmp.ne.s32.totalorder %s628_s3, %s469_s24  ;;  %s45_s21 = int_to_ptr.vmem [resolvable:$true] %s44_s21 }
  0x26   :  { %p473_p3 = scmp.lt.u32.totalorder %s469_s24, %s628_s3 }
  0x28   :  { %p475_p4 = pnand %p473_p3, %p470_p2 }
  0x2a   :  { %478 = shalt.err (!%p475_p4)
}
  0x2b   :  { %s479_s6 = scalar_lea.vmem %s45_s21, 1024  ;;  %p484_p6 = scmp.lt.s32.totalorder %s45_s21, %s45_s21 }
  0x2c   :  { %p480_p5 = scmp.ne.s32.totalorder %s45_s21, %s479_s6  ;;  %p485_p7 = scmp.lt.s32.totalorder %s479_s6, %s479_s6 }
  0x2e   :  { %p486_p8 = por %p485_p7, %p484_p6 }
  0x30   :  { %p487_p9 = pnand %p486_p8, %p480_p5 }
  0x32   :  { %490 = shalt.err (!%p487_p9)
}
  0x33   :  { %50 = dma.hbm_to_vmem [thread:$0]  %s628_s3, 1024, %s45_s21, [#allocation7], %s520_s28, %s520_s28, %s521_s29  }
  0x34   :  { %513 = dma.done.wait [#allocation4], 256  }
  0x35   :  { %514 = vsyncadd [#allocation4], 4294967040 }
  0x36   :  { %515 = dma.done.wait [#allocation7], 2048  }
  0x37   :  { %516 = vsyncadd [#allocation7], 4294965248  ;;  %v526_v0 = vmov 0.0   ;;  %vm527_vm0 = vmmov 0   ;;  %v409_v1 = vld [vmem:[#allocation6] sm:$0xff]   ;;  %v410_v2 = vld [vmem:[#allocation6 + $0x8] sm:$0xff]  }
  0x38   :  { %359 = vmatprep.subr.bf16.mxu0 %v526_v0  ;;  %63 = vst [vmem:[#allocation2] sm:$0xff] %v526_v0  ;;  %64 = vst [vmem:[#allocation2 + $0x8] sm:$0xff] %v526_v0  ;;  %375 = vmatprep.mubr.msk.bf16.mxu0 %vm527_vm0, %v526_v0  ;;  %v411_v3 = vld [vmem:[#allocation6 + $0x10] sm:$0xff]   ;;  %vm67_vm1 = vcmask 130048   ;;  %v66_v5 = vld [vmem:[#allocation3 + $0x8] sm:$0xff]  ;;  %vm302_vm2 = vcmask 261120  }
  0x39   :  { %379 = vmatprep.subr.bf16.mxu1 %v526_v0  ;;  %395 = vmatprep.mubr.msk.bf16.mxu1 %vm527_vm0, %v526_v0  ;;  %v65_v4 = vld [vmem:[#allocation3] sm:$0xff]  ;;  %69 = vst.msk [vmem:[#allocation2 + $0x8] sm:$0xff] %vm67_vm1, %v66_v5  ;;  %v417_v6 = vld [vmem:[#allocation8] sm:$0xff]   ;;  %v412_v7 = vld [vmem:[#allocation6 + $0x18] sm:$0xff]  }
  0x3a   :  { %360 = vmatpush3.bf16.msra.mxu0 %v409_v1  ;;  %68 = vst.msk [vmem:[#allocation2] sm:$0xff] %vm67_vm1, %v65_v4  ;;  %380 = vmatpush3.bf16.msra.mxu1 %v417_v6  ;;  %v418_v8 = vld [vmem:[#allocation8 + $0x8] sm:$0xff]   ;;  %v413_v9 = vld [vmem:[#allocation6 + $0x20] sm:$0xff]   ;;  %v419_v10 = vld [vmem:[#allocation8 + $0x10] sm:$0xff]  }
  0x3b   :  { %361 = vmatprep.subr.bf16.mxu0 %v526_v0  ;;  %381 = vmatprep.subr.bf16.mxu1 %v526_v0  ;;  %v414_v11 = vld [vmem:[#allocation6 + $0x28] sm:$0xff]   ;;  %v420_v12 = vld [vmem:[#allocation8 + $0x18] sm:$0xff]   ;;  %v415_v13 = vld [vmem:[#allocation6 + $0x30] sm:$0xff]  }
  0x3c   :  { %v421_v14 = vld [vmem:[#allocation8 + $0x20] sm:$0xff]   ;;  %v416_v15 = vld [vmem:[#allocation6 + $0x38] sm:$0xff]   ;;  %v422_v18 = vld [vmem:[#allocation8 + $0x28] sm:$0xff]  }
  0x3d   :  { %v423_v20 = vld [vmem:[#allocation8 + $0x30] sm:$0xff]   ;;  %v424_v21 = vld [vmem:[#allocation8 + $0x38] sm:$0xff]   ;;  %v323_v22 = vld [vmem:[%s627_s2] ss:$0 sm:$0xff]  ;;  %s528_s2 = smov [#allocation9]  }
  0x3e   :  { %362 = vmatpush3.bf16.msra.mxu0 %v410_v2  ;;  %382 = vmatpush3.bf16.msra.mxu1 %v418_v8  ;;  %v332_v32 = vld [vmem:[%s629_s4] ss:$0 sm:$0xff]  ;;  %s310_s9 = sshll.u32 %s528_s2, 4  ;;  %s311_s9 = int_to_ptr.vmem [resolvable:$true] %s310_s9 }
  0x3f   :  { %363 = vmatprep.subr.bf16.mxu0 %v526_v0  ;;  %383 = vmatprep.subr.bf16.mxu1 %v526_v0  ;;  %s491_s10 = scalar_lea.vmem %s311_s9, 256  ;;  %p496_p11 = scmp.lt.s32.totalorder %s311_s9, %s311_s9 }
  0x40   :  { %v71_v17 = vld [vmem:[#allocation2 + $0x8] sm:$0xff]  ;;  %p492_p10 = scmp.ne.s32.totalorder %s311_s9, %s491_s10  ;;  %p497_p12 = scmp.lt.s32.totalorder %s491_s10, %s491_s10 }
  0x41   :  { %v70_v16 = vld [vmem:[#allocation2] sm:$0xff] }
  0x42   :  { %364 = vmatpush3.bf16.msra.mxu0 %v411_v3  ;;  %384 = vmatpush3.bf16.msra.mxu1 %v419_v10  ;;  %v72_v19 = vpack.c.bf16 %v71_v17, %v70_v16  ;;  %p498_p13 = por %p497_p12, %p496_p11 }
  0x43   :  { %365 = vmatprep.subr.bf16.mxu0 %v526_v0  ;;  %385 = vmatprep.subr.bf16.mxu1 %v526_v0 }
  0x44   :  { %p499_p0 = pnand %p498_p13, %p492_p10 }
  0x46   :  { %366 = vmatpush3.bf16.msra.mxu0 %v412_v7  ;;  %386 = vmatpush3.bf16.msra.mxu1 %v420_v12 }
  0x47   :  { %367 = vmatprep.subr.bf16.mxu0 %v526_v0  ;;  %387 = vmatprep.subr.bf16.mxu1 %v526_v0 }
  0x4a   :  { %368 = vmatpush3.bf16.msra.mxu0 %v413_v9  ;;  %388 = vmatpush3.bf16.msra.mxu1 %v421_v14 }
  0x4b   :  { %369 = vmatprep.subr.bf16.mxu0 %v526_v0  ;;  %389 = vmatprep.subr.bf16.mxu1 %v526_v0 }
  0x4e   :  { %370 = vmatpush3.bf16.msra.mxu0 %v414_v11  ;;  %390 = vmatpush3.bf16.msra.mxu1 %v422_v18 }
  0x4f   :  { %371 = vmatprep.subr.bf16.mxu0 %v526_v0  ;;  %391 = vmatprep.subr.bf16.mxu1 %v526_v0 }
  0x52   :  { %372 = vmatpush3.bf16.msra.mxu0 %v415_v13  ;;  %392 = vmatpush3.bf16.msra.mxu1 %v423_v20 }
  0x53   :  { %373 = vmatprep.subr.bf16.mxu0 %v526_v0  ;;  %393 = vmatprep.subr.bf16.mxu1 %v526_v0 }
  0x56   :  { %374 = vmatpush3.bf16.msra.mxu0 %v416_v15  ;;  %394 = vmatpush3.bf16.msra.mxu1 %v424_v21 }
  0x59   :  { %376 = vmatmul.mubr.bf16.vlgmr.msra.gmra.mrb[0].mxu0 %v72_v19 }
 0x12c   :  { %v178_v23 = vpop.f32.mrb[0].mxu0 }
 0x12d   :  { %v179_v24 = vadd.f32 %v323_v22, %v178_v23  ;;  %v377_v25 = vpop.f32.mrb[1].mxu0 }
 0x12e   :  { %v181_v26 = vpop.f32.mrb[2].mxu0 }
 0x12f   :  { %v182_v27 = vadd.f32 %v323_v22, %v181_v26  ;;  %v378_v28 = vpop.f32.mrb[3].mxu0  ;;  %v185_v29 = vmax.f32 %v179_v24, 0.0 }
 0x131   :  { %v186_v30 = vmax.f32 %v182_v27, 0.0 }
 0x133   :  { %v187_v31 = vpack.c.bf16 %v186_v30, %v185_v29 }
 0x135   :  { %396 = vmatmul.mubr.bf16.vlgmr.msra.gmra.mrb[0].mxu1 %v187_v31 }
 0x208   :  { %v293_v33 = vpop.f32.mrb[0].mxu1 }
 0x209   :  { %v294_v34 = vadd.f32 %v332_v32, %v293_v33  ;;  %v397_v35 = vpop.f32.mrb[1].mxu1 }
 0x20a   :  { %v296_v36 = vpop.f32.mrb[2].mxu1 }
 0x20b   :  { %v300_v37 = vmax.f32 %v294_v34, 0.0  ;;  %v297_v38 = vadd.f32 %v332_v32, %v296_v36  ;;  %v398_v39 = vpop.f32.mrb[3].mxu1 }
 0x20d   :  { %v301_v40 = vmax.f32 %v297_v38, 0.0  ;;  %303 = vst.msk [vmem:[#allocation9] sm:$0xff] %vm302_vm2, %v300_v37 }
 0x20f   :  { %304 = vst.msk [vmem:[#allocation9 + $0x8] sm:$0xff] %vm302_vm2, %v301_v40 }
 0x210   :  { %502 = shalt.err (!%p499_p0)
}
 0x211   :  { %s503_s12 = scalar_lea.hbm %s630_s5, 256 }
 0x212   :  { %p504_p1 = scmp.ne.s32.totalorder %s630_s5, %s503_s12  ;;  %p507_p2 = scmp.lt.u32.totalorder %s503_s12, %s630_s5 }
 0x214   :  { %p509_p3 = pnand %p507_p2, %p504_p1 }
 0x216   :  { %512 = shalt.err (!%p509_p3)
}
 0x217   :  { %316 = dma.vmem_to_hbm [thread:$0]  %s311_s9, 256, %s630_s5, [#allocation5], %s523_s1, %s523_s1, %s524_s17  }
 0x218   :  { %517 = dma.done.wait [#allocation5], 256  }
 0x219   :  { %518 = vsyncadd [#allocation5], 4294967040 }
 0x21a   :  { %320 = vsyncpa [#allocation4], 1 }
 0x21b   :  { %321 = vsyncpa [#allocation7], 1 }
 0x21c   :  { %322 = vsyncpa [#allocation5], 1 }

</bundles_post_ra>
